<compile_context>
chip_gen: v7x
topology: tpu7x:2x2x1
jax: 0.10.0
libtpu: 0.0.40
codegen_flags: <defaults>
</compile_context>

<pallas_src>
import functools

import jax
import jax.numpy as jnp
import numpy as np
from jax.experimental import pallas as pl
from jax.experimental.pallas import tpu as pltpu


_VREG_F32_BUDGET = 32 * 1024          # ~32 vregs of f32 for the column-pass value


def _parabolic_pool_kernel(x_ref, taps_ref, out_ref, xp_ref, *,
                           ks, stride, pad, col0, single_row_tile):
    """One grid step: a block of planes (on lanes) x one tile of output rows.

    x_ref:    (H, W, Bb)         input planes, native dtype (Bb planes on lanes)
    taps_ref: (ks, Bb)           separable parabolic taps per plane (f32)
    out_ref:  (ho_blk, Wo, Bb)   strided output tile
    xp_ref:   (h_scr, w_scr, Bb) VMEM scratch: -inf padded planes (f32),
                                 interior at rows [pad, pad+H), cols [col0, col0+W)
    """
    h_in, w_in, bb = x_ref.shape
    ho_blk, w_out, _ = out_ref.shape
    h_scr, w_scr, _ = xp_ref.shape
    slab_rows = ho_blk * stride + ks - 1
    neg_inf = jnp.float32(-jnp.inf)

    # 1) Build the padded plane once per plane-block (it persists across the
    #    output-row-tile axis, which is "arbitrary").  Only the halo border is
    #    filled; the interior is one sublane-aligned copy (cast to f32 here).
    @pl.when(pl.program_id(1) == 0)
    def _build_padded_plane():
        if col0 > 0:                                   # left -inf border
            xp_ref[:, 0:col0, :] = jnp.full((h_scr, col0, bb), neg_inf, jnp.float32)
        right = w_scr - (col0 + w_in)
        if right > 0:                                  # right -inf border
            xp_ref[:, col0 + w_in:, :] = jnp.full((h_scr, right, bb), neg_inf,
                                                  jnp.float32)
        if pad > 0:                                    # top -inf border
            xp_ref[0:pad, col0:col0 + w_in, :] = jnp.full((pad, w_in, bb), neg_inf,
                                                          jnp.float32)
        bottom = h_scr - (pad + h_in)
        if bottom > 0:                                 # bottom -inf border
            xp_ref[pad + h_in:, col0:col0 + w_in, :] = jnp.full(
                (bottom, w_in, bb), neg_inf, jnp.float32)
        xp_ref[pad:pad + h_in, col0:col0 + w_in, :] = x_ref[...].astype(jnp.float32)

    taps = taps_ref[...].astype(jnp.float32)           # (ks, Bb)

    if single_row_tile:
        row0 = 0                                        # fully static indexing
    else:
        row0 = pl.multiple_of(pl.program_id(1) * (ho_blk * stride),
                              ho_blk * stride)

    # 2) Column (W) pass on the row slab of this tile:
    #    gcol[r, xo, b] = max_dx xp[row0 + r, col0 - pad + xo*stride + dx, b]
    #                             + tap[dx, b]
    #    Stride decimation on W uses sublane-strided ref reads; the result stays
    #    in vregs (no scratch store/reload).
    gcol = jnp.full((slab_rows, w_out, bb), neg_inf, jnp.float32)
    for dx in range(ks):
        c0 = col0 - pad + dx
        if stride == 1:
            cols = xp_ref[pl.ds(row0, slab_rows), c0:c0 + w_out, :]
        else:
            cols = xp_ref[pl.ds(row0, slab_rows),
                          pl.ds(c0, w_out, stride=stride), :]
        gcol = jnp.maximum(gcol, cols + taps[dx][None, None, :])

    # 3) Row (H) pass: out[yo, xo, b] = max_dy gcol[yo*stride + dy, xo, b]
    #                                            + tap[dy, b]
    #    Row decimation is a free outer-axis reshape of the in-vreg value.
    acc = jnp.full((ho_blk, w_out, bb), neg_inf, jnp.float32)
    for dy in range(ks):
        rows = gcol[dy:dy + ho_blk * stride]
        if stride > 1:
            rows = rows.reshape(ho_blk, stride, w_out, bb)[:, 0]
        acc = jnp.maximum(acc, rows + taps[dy][None, None, :])
    out_ref[...] = acc.astype(out_ref.dtype)


def compute_parabolic_kernel(t, ks):
    """Full 2-D kernel h[c] = -(z_i^2 + z_j^2)/(4 t[c]); used for the reference."""
    start = -ks // 2 + 1           # python floor-div, matches the torch code
    stop = ks // 2
    z = jnp.linspace(float(start), float(stop), ks, dtype=jnp.float32)
    z_c = z[:, None] ** 2 + z[None, :] ** 2
    return -z_c[None, :, :] / (4.0 * t[:, None, None])       # (C, ks, ks)


def _separable_taps(t, ks, n):
    """tap[dy, b] = -z[dy]^2 / (4 t[b % C]) over the flattened N*C plane axis."""
    start = -ks // 2 + 1
    stop = ks // 2
    z = jnp.linspace(float(start), float(stop), ks, dtype=jnp.float32)
    t_b = jnp.tile(t.astype(jnp.float32), (n,))               # (N*C,)
    return -(z * z)[:, None] / (4.0 * t_b[None, :])           # (ks, N*C)


def _vmem_capacity_bytes():
    """Generation-aware VMEM capacity; conservative (v7x per-TC) fallback."""
    try:
        info = pltpu.get_tpu_info()
        for name in ("vmem_capacity_bytes", "vmem_bytes", "vmem_size_bytes"):
            v = getattr(info, name, None)
            if v:
                return int(v)
    except Exception:
        pass
    return 64 * 2 ** 20


def parabolic_pool2d_v2(f, t, *, kernel_size=3, stride=2, _row_tiles=None):
    """f: (N, C, H, W); t: (C,). Returns (N, C, Ho, Wo) in f.dtype."""
    n, c, h, w = f.shape
    ks = int(kernel_size)
    st = int(stride)
    pad = ks // 2
    b = n * c
    h_out = (h + 2 * pad - ks) // st + 1
    w_out = (w + 2 * pad - ks) // st + 1

    # Sublane-aligned interior start so the in-kernel copy is unmasked.
    col0 = 0 if pad == 0 else ((pad + 7) // 8) * 8
    w_scr = col0 + w + pad

    taps = _separable_taps(t, ks, n)                           # (ks, B) f32

    # Lane-dense layout: flattened N*C plane axis on lanes, W on sublanes,
    # H on the outer axis.  Native dtype (no forced f32 cast).
    x_hwb = jnp.transpose(f.reshape(b, h, w), (1, 2, 0))

    in_bytes = np.dtype(f.dtype).itemsize
    out_dtype = f.dtype
    out_bytes = np.dtype(out_dtype).itemsize

    vmem_cap = _vmem_capacity_bytes()
    budget = (vmem_cap * 3) // 4            # ~48 MiB on v7x, ~96 MiB on v5e/v6e

    # Last block dim must be a multiple of 128 or the full plane axis.
    bb = b if b <= 128 else 128

    def plan(bb_):
        if _row_tiles is not None:
            n_h_ = int(_row_tiles)
        else:
            max_slab = _VREG_F32_BUDGET // max(1, w_out * bb_)
            ho_cap = (max_slab - (ks - 1)) // st
            ho_cap = max(ho_cap, min(8, h_out), 1)
            n_h_ = pl.cdiv(h_out, min(h_out, ho_cap))
        ho_ = pl.cdiv(h_out, n_h_)
        n_h_ = pl.cdiv(h_out, ho_)
        slab_ = ho_ * st + ks - 1
        h_scr_ = max(h + 2 * pad, n_h_ * ho_ * st + ks - 1)
        est = (2 * h * w * bb_ * in_bytes           # input block (double buffered)
               + 2 * ho_ * w_out * bb_ * out_bytes  # output block
               + h_scr_ * w_scr * bb_ * 4           # padded-plane scratch
               + slab_ * w_out * bb_ * 4            # column-pass value (vregs/spill)
               + 2 * ks * bb_ * 4)                  # taps
        return n_h_, ho_, h_scr_, est

    n_h, ho_blk, h_scr, est = plan(bb)
    if b > 128:
        # Grow the lane block while VMEM allows, keeping >= 2 plane blocks so a
        # v7x megacore has work for both TensorCores on the "parallel" axis.
        while (b // (bb * 2)) >= 2:
            cand = plan(bb * 2)
            if cand[-1] <= budget:
                bb *= 2
                n_h, ho_blk, h_scr, est = cand
            else:
                break

    grid_b = pl.cdiv(b, bb)
    vmem_limit = int(min(int(vmem_cap * 0.9), max(32 * 2 ** 20, 2 * est)))

    kernel = functools.partial(
        _parabolic_pool_kernel, ks=ks, stride=st, pad=pad, col0=col0,
        single_row_tile=(n_h == 1))

    out_hwb = pl.pallas_call(
        kernel,
        out_shape=jax.ShapeDtypeStruct((h_out, w_out, b), out_dtype),
        grid_spec=pltpu.PrefetchScalarGridSpec(
            num_scalar_prefetch=0,
            grid=(grid_b, n_h),
            in_specs=[
                pl.BlockSpec((h, w, bb), lambda ib, ih: (0, 0, ib)),
                pl.BlockSpec((ks, bb), lambda ib, ih: (0, ib)),
            ],
            out_specs=pl.BlockSpec((ho_blk, w_out, bb),
                                   lambda ib, ih: (ih, 0, ib)),
            scratch_shapes=[
                pltpu.VMEM((h_scr, w_scr, bb), jnp.float32),
            ],
        ),
        compiler_params=pltpu.CompilerParams(
            # Axis 1 must be "arbitrary": the padded-plane build is guarded on
            # ih == 0 and the scratch persists across ih.  Megacore shards the
            # plane axis (axis 0).
            dimension_semantics=("parallel", "arbitrary"),
            vmem_limit_bytes=vmem_limit,
        ),
    )(x_hwb, taps)

    # Back to NCHW.
    return jnp.transpose(out_hwb, (2, 0, 1)).reshape(n, c, h_out, w_out)


def _reference_pool(f, hker, ks, stride):
    """Pure numpy reference for correctness checking."""
    f = np.asarray(f, dtype=np.float32)
    hker = np.asarray(hker, dtype=np.float32)
    n, c, H, W = f.shape
    pad = ks // 2
    xp = np.full((n, c, H + 2 * pad, W + 2 * pad), -np.inf, dtype=np.float32)
    xp[:, :, pad:pad + H, pad:pad + W] = f
    Ho = (H + 2 * pad - ks) // stride + 1
    Wo = (W + 2 * pad - ks) // stride + 1
    out = np.full((n, c, Ho, Wo), -np.inf, dtype=np.float32)
    for dy in range(ks):
        for dx in range(ks):
            win = xp[
                :, :,
                dy:dy + stride * (Ho - 1) + 1:stride,
                dx:dx + stride * (Wo - 1) + 1:stride,
            ]
            out = np.maximum(out, win + hker[None, :, dy, dx, None, None])
    return out


if __name__ == "__main__":
    key = jax.random.PRNGKey(0)

    configs = [
        # main shape from the module spec
        dict(shape=(2, 4, 16, 16), ks=3, stride=2, row_tiles=None),
        # odd h_out + forced row tiling: exercises the partial last output-row
        # tile, the pl.when(ih==0) rebuild guard, and dynamic row offsets
        dict(shape=(1, 3, 18, 16), ks=3, stride=2, row_tiles=2),
        # stride-1 / larger-kernel path (static column slices, pad=2)
        dict(shape=(1, 2, 12, 12), ks=5, stride=1, row_tiles=None),
    ]

    for cfg in configs:
        k_f, k_t, key = jax.random.split(key, 3)
        n_, c_, h_, w_ = cfg["shape"]
        f = jax.random.normal(k_f, (n_, c_, h_, w_), dtype=jnp.float32)
        # t ~ Uniform(0, 4), matching torch.nn.init.uniform_(t, a=0.0, b=4.0)
        t = jax.random.uniform(k_t, (c_,), dtype=jnp.float32,
                               minval=0.0, maxval=4.0)

        out = parabolic_pool2d_v2(f, t, kernel_size=cfg["ks"],
                                  stride=cfg["stride"],
                                  _row_tiles=cfg["row_tiles"])
        out = jax.block_until_ready(out)

        hker = np.asarray(compute_parabolic_kernel(t, cfg["ks"]))
        ref = _reference_pool(np.asarray(f), hker, cfg["ks"], cfg["stride"])
        assert out.shape == ref.shape, (out.shape, ref.shape)
        np.testing.assert_allclose(np.asarray(out), ref, rtol=1e-5, atol=1e-5)

    print("KERNEL_OK")
</pallas_src>

<mosaic_0001>
module attributes {stable_mosaic.version = 11 : i64} {
  func.func @_parabolic_pool_kernel(%arg0: i32, %arg1: i32, %arg2: memref<16x16x8xf32, #tpu.memory_space<vmem>>, %arg3: memref<3x8xf32, #tpu.memory_space<vmem>>, %arg4: memref<8x8x8xf32, #tpu.memory_space<vmem>>, %arg5: memref<18x25x8xf32, #tpu.memory_space<vmem>>) attributes {dimension_semantics = [#tpu.dimension_semantics<parallel>, #tpu.dimension_semantics<arbitrary>], iteration_bounds = array<i64: 1, 1>, scalar_prefetch = 0 : i64, scratch_operands = 1 : i64, tpu.core_type = #tpu.core_type<tc>, window_params = [{transform_indices = @transform_0, window_bounds = array<i64: 16, 16, 8>}, {transform_indices = @transform_1, window_bounds = array<i64: 3, 8>}, {transform_indices = @transform_2, window_bounds = array<i64: 8, 8, 8>}]} {
    %c0_i32 = arith.constant 0 : i32
    %0 = arith.cmpi eq, %arg1, %c0_i32 : i32
    %1 = arith.extui %0 : i1 to i32
    %cst = arith.constant 0xFF800000 : f32
    %c0_i32_0 = arith.constant 0 : i32
    %2 = arith.cmpi ne, %1, %c0_i32_0 : i32
    scf.if %2 {
      %58 = vector.broadcast %cst : f32 to vector<18x8x8xf32>
      %c0_13 = arith.constant 0 : index
      %c0_14 = arith.constant 0 : index
      %c0_15 = arith.constant 0 : index
      %59 = vector.load %arg5[%c0_13, %c0_14, %c0_15] : memref<18x25x8xf32, #tpu.memory_space<vmem>>, vector<18x8x8xf32>
      tpu.vector_store %arg5[%c0_13, %c0_14, %c0_15], %58 {strides = array<i32>} : memref<18x25x8xf32, #tpu.memory_space<vmem>>, vector<18x8x8xf32>,
      %60 = vector.broadcast %cst : f32 to vector<18x1x8xf32>
      %c0_16 = arith.constant 0 : index
      %c24 = arith.constant 24 : index
      %c0_17 = arith.constant 0 : index
      %61 = vector.load %arg5[%c0_16, %c24, %c0_17] : memref<18x25x8xf32, #tpu.memory_space<vmem>>, vector<18x1x8xf32>
      tpu.vector_store %arg5[%c0_16, %c24, %c0_17], %60 {strides = array<i32>} : memref<18x25x8xf32, #tpu.memory_space<vmem>>, vector<18x1x8xf32>,
      %62 = vector.broadcast %cst : f32 to vector<1x16x8xf32>
      %c0_18 = arith.constant 0 : index
      %c8_19 = arith.constant 8 : index
      %c0_20 = arith.constant 0 : index
      %63 = vector.load %arg5[%c0_18, %c8_19, %c0_20] : memref<18x25x8xf32, #tpu.memory_space<vmem>>, vector<1x16x8xf32>
      tpu.vector_store %arg5[%c0_18, %c8_19, %c0_20], %62 {strides = array<i32>} : memref<18x25x8xf32, #tpu.memory_space<vmem>>, vector<1x16x8xf32>,
      %64 = vector.broadcast %cst : f32 to vector<1x16x8xf32>
      %c17 = arith.constant 17 : index
      %c8_21 = arith.constant 8 : index
      %c0_22 = arith.constant 0 : index
      %65 = vector.load %arg5[%c17, %c8_21, %c0_22] : memref<18x25x8xf32, #tpu.memory_space<vmem>>, vector<1x16x8xf32>
      tpu.vector_store %arg5[%c17, %c8_21, %c0_22], %64 {strides = array<i32>} : memref<18x25x8xf32, #tpu.memory_space<vmem>>, vector<1x16x8xf32>,
      %c0_23 = arith.constant 0 : index
      %c0_24 = arith.constant 0 : index
      %c0_25 = arith.constant 0 : index
      %66 = vector.load %arg2[%c0_23, %c0_24, %c0_25] : memref<16x16x8xf32, #tpu.memory_space<vmem>>, vector<16x16x8xf32>
      %c1 = arith.constant 1 : index
      %c8_26 = arith.constant 8 : index
      %c0_27 = arith.constant 0 : index
      %67 = vector.load %arg5[%c1, %c8_26, %c0_27] : memref<18x25x8xf32, #tpu.memory_space<vmem>>, vector<16x16x8xf32>
      tpu.vector_store %arg5[%c1, %c8_26, %c0_27], %66 {strides = array<i32>} : memref<18x25x8xf32, #tpu.memory_space<vmem>>, vector<16x16x8xf32>,
    } else {
    }
    %c0 = arith.constant 0 : index
    %c0_1 = arith.constant 0 : index
    %3 = vector.load %arg3[%c0, %c0_1] : memref<3x8xf32, #tpu.memory_space<vmem>>, vector<3x8xf32>
    %cst_2 = arith.constant 0xFF800000 : f32
    %4 = vector.broadcast %cst_2 : f32 to vector<18x8x8xf32>
    %c0_3 = arith.constant 0 : index
    %c7 = arith.constant 7 : index
    %c0_4 = arith.constant 0 : index
    %5 = tpu.strided_load %arg5[%c0_3, %c7, %c0_4] {strides = array<i32: 1, 2, 1>} : memref<18x25x8xf32, #tpu.memory_space<vmem>>, vector<18x8x8xf32>
    %6 = vector.extract_strided_slice %3 {offsets = [0, 0], sizes = [1, 8], strides = [1, 1]} : vector<3x8xf32> to vector<1x8xf32>
    %7 = vector.shape_cast %6 : vector<1x8xf32> to vector<8xf32>
    %8 = vector.shape_cast %7 : vector<8xf32> to vector<1x1x8xf32>
    %9 = vector.broadcast %8 : vector<1x1x8xf32> to vector<18x8x8xf32>
    %10 = arith.addf %5, %9 : vector<18x8x8xf32>
    %11 = arith.maximumf %4, %10 : vector<18x8x8xf32>
    %c0_5 = arith.constant 0 : index
    %c8 = arith.constant 8 : index
    %c0_6 = arith.constant 0 : index
    %12 = tpu.strided_load %arg5[%c0_5, %c8, %c0_6] {strides = array<i32: 1, 2, 1>} : memref<18x25x8xf32, #tpu.memory_space<vmem>>, vector<18x8x8xf32>
    %13 = vector.extract_strided_slice %3 {offsets = [1, 0], sizes = [1, 8], strides = [1, 1]} : vector<3x8xf32> to vector<1x8xf32>
    %14 = vector.shape_cast %13 : vector<1x8xf32> to vector<8xf32>
    %15 = vector.shape_cast %14 : vector<8xf32> to vector<1x1x8xf32>
    %16 = vector.broadcast %15 : vector<1x1x8xf32> to vector<18x8x8xf32>
    %17 = arith.addf %12, %16 : vector<18x8x8xf32>
    %18 = arith.maximumf %11, %17 : vector<18x8x8xf32>
    %c0_7 = arith.constant 0 : index
    %c9 = arith.constant 9 : index
    %c0_8 = arith.constant 0 : index
    %19 = tpu.strided_load %arg5[%c0_7, %c9, %c0_8] {strides = array<i32: 1, 2, 1>} : memref<18x25x8xf32, #tpu.memory_space<vmem>>, vector<18x8x8xf32>
    %20 = vector.extract_strided_slice %3 {offsets = [2, 0], sizes = [1, 8], strides = [1, 1]} : vector<3x8xf32> to vector<1x8xf32>
    %21 = vector.shape_cast %20 : vector<1x8xf32> to vector<8xf32>
    %22 = vector.shape_cast %21 : vector<8xf32> to vector<1x1x8xf32>
    %23 = vector.broadcast %22 : vector<1x1x8xf32> to vector<18x8x8xf32>
    %24 = arith.addf %19, %23 : vector<18x8x8xf32>
    %25 = arith.maximumf %18, %24 : vector<18x8x8xf32>
    %cst_9 = arith.constant 0xFF800000 : f32
    %26 = vector.broadcast %cst_9 : f32 to vector<8x8x8xf32>
    %27 = vector.extract_strided_slice %25 {offsets = [0, 0, 0], sizes = [16, 8, 8], strides = [1, 1, 1]} : vector<18x8x8xf32> to vector<16x8x8xf32>
    %28 = vector.shape_cast %27 : vector<16x8x8xf32> to vector<8x2x8x8xf32>
    %29 = vector.extract_strided_slice %28 {offsets = [0, 0, 0, 0], sizes = [8, 1, 8, 8], strides = [1, 1, 1, 1]} : vector<8x2x8x8xf32> to vector<8x1x8x8xf32>
    %30 = vector.shape_cast %29 : vector<8x1x8x8xf32> to vector<8x8x8xf32>
    %31 = vector.extract_strided_slice %3 {offsets = [0, 0], sizes = [1, 8], strides = [1, 1]} : vector<3x8xf32> to vector<1x8xf32>
    %32 = vector.shape_cast %31 : vector<1x8xf32> to vector<8xf32>
    %33 = vector.shape_cast %32 : vector<8xf32> to vector<1x1x8xf32>
    %34 = vector.broadcast %33 : vector<1x1x8xf32> to vector<8x8x8xf32>
    %35 = arith.addf %30, %34 : vector<8x8x8xf32>
    %36 = arith.maximumf %26, %35 : vector<8x8x8xf32>
    %37 = vector.extract_strided_slice %25 {offsets = [1, 0, 0], sizes = [16, 8, 8], strides = [1, 1, 1]} : vector<18x8x8xf32> to vector<16x8x8xf32>
    %38 = vector.shape_cast %37 : vector<16x8x8xf32> to vector<8x2x8x8xf32>
    %39 = vector.extract_strided_slice %38 {offsets = [0, 0, 0, 0], sizes = [8, 1, 8, 8], strides = [1, 1, 1, 1]} : vector<8x2x8x8xf32> to vector<8x1x8x8xf32>
    %40 = vector.shape_cast %39 : vector<8x1x8x8xf32> to vector<8x8x8xf32>
    %41 = vector.extract_strided_slice %3 {offsets = [1, 0], sizes = [1, 8], strides = [1, 1]} : vector<3x8xf32> to vector<1x8xf32>
    %42 = vector.shape_cast %41 : vector<1x8xf32> to vector<8xf32>
    %43 = vector.shape_cast %42 : vector<8xf32> to vector<1x1x8xf32>
    %44 = vector.broadcast %43 : vector<1x1x8xf32> to vector<8x8x8xf32>
    %45 = arith.addf %40, %44 : vector<8x8x8xf32>
    %46 = arith.maximumf %36, %45 : vector<8x8x8xf32>
    %47 = vector.extract_strided_slice %25 {offsets = [2, 0, 0], sizes = [16, 8, 8], strides = [1, 1, 1]} : vector<18x8x8xf32> to vector<16x8x8xf32>
    %48 = vector.shape_cast %47 : vector<16x8x8xf32> to vector<8x2x8x8xf32>
    %49 = vector.extract_strided_slice %48 {offsets = [0, 0, 0, 0], sizes = [8, 1, 8, 8], strides = [1, 1, 1, 1]} : vector<8x2x8x8xf32> to vector<8x1x8x8xf32>
    %50 = vector.shape_cast %49 : vector<8x1x8x8xf32> to vector<8x8x8xf32>
    %51 = vector.extract_strided_slice %3 {offsets = [2, 0], sizes = [1, 8], strides = [1, 1]} : vector<3x8xf32> to vector<1x8xf32>
    %52 = vector.shape_cast %51 : vector<1x8xf32> to vector<8xf32>
    %53 = vector.shape_cast %52 : vector<8xf32> to vector<1x1x8xf32>
    %54 = vector.broadcast %53 : vector<1x1x8xf32> to vector<8x8x8xf32>
    %55 = arith.addf %50, %54 : vector<8x8x8xf32>
    %56 = arith.maximumf %46, %55 : vector<8x8x8xf32>
    %c0_10 = arith.constant 0 : index
    %c0_11 = arith.constant 0 : index
    %c0_12 = arith.constant 0 : index
    %57 = vector.load %arg4[%c0_10, %c0_11, %c0_12] : memref<8x8x8xf32, #tpu.memory_space<vmem>>, vector<8x8x8xf32>
    tpu.vector_store %arg4[%c0_10, %c0_11, %c0_12], %56 {strides = array<i32>} : memref<8x8x8xf32, #tpu.memory_space<vmem>>, vector<8x8x8xf32>,
    return
  }
  func.func @transform_0(%arg0: i32, %arg1: i32) -> (i32, i32, i32) {
    %c0_i32 = arith.constant 0 : i32
    %c0_i32_0 = arith.constant 0 : i32
    %c0_i32_1 = arith.constant 0 : i32
    return %c0_i32, %c0_i32_0, %arg0 : i32, i32, i32
  }
  func.func @transform_1(%arg0: i32, %arg1: i32) -> (i32, i32) {
    %c0_i32 = arith.constant 0 : i32
    %c0_i32_0 = arith.constant 0 : i32
    return %c0_i32, %arg0 : i32, i32
  }
  func.func @transform_2(%arg0: i32, %arg1: i32) -> (i32, i32, i32) {
    %c0_i32 = arith.constant 0 : i32
    %c0_i32_0 = arith.constant 0 : i32
    return %arg1, %c0_i32, %arg0 : i32, i32, i32
  }
}

</mosaic_0001>

<bundles_post_ra>
// kernel: tpu_custom_call.1
= control target key start
LH: loop header
LB: loop body
LE: loop exit
PB: predicated region body
PF: predicated region fallthrough
CT: control target
= control target key end

     0   :  { %vm16_vm0 = vcmask 64512   ;;  %v159_v3 = vlaneseq  ;;  %v417_v4 = vmov -inf   ;;  %s687_s0 = inlined_call_operand.vmem [shape: f32[16,16,8], index: 0, kind: input, shape index: {}]   ;;  %s688_s1 = inlined_call_operand.vmem [shape: f32[3,8], index: 1, kind: input, shape index: {}]   ;;  %s689_s2 = inlined_call_operand.hbm [shape: f32[8,8,8], index: 2, kind: output, shape index: {}]  }
   0x1   :  { %v59_v0 = vld [vmem:[%s687_s0] sm:$0xff]  ;;  %v60_v1 = vld [vmem:[%s687_s0 + $0x8] sm:$0xff]  ;;  %v61_v2 = vld [vmem:[%s687_s0 + $0x10] sm:$0xff]  ;;  %17 = vst.msk [vmem:[#allocation2] sm:$0xff] %vm16_vm0, %v417_v4 }
   0x2   :  { %18 = vst.msk [vmem:[#allocation2 + $0x20] sm:$0xff] %vm16_vm0, %v417_v4  ;;  %19 = vst.msk [vmem:[#allocation2 + $0x40] sm:$0xff] %vm16_vm0, %v417_v4  ;;  %v62_v5 = vld [vmem:[%s687_s0 + $0x18] sm:$0xff]  ;;  %v63_v6 = vld [vmem:[%s687_s0 + $0x20] sm:$0xff]  ;;  %v160_v14 = vshrl.u32 %v159_v3, 7 }
   0x3   :  { %20 = vst.msk [vmem:[#allocation2 + $0x60] sm:$0xff] %vm16_vm0, %v417_v4  ;;  %21 = vst.msk [vmem:[#allocation2 + $0x80] sm:$0xff] %vm16_vm0, %v417_v4  ;;  %v64_v7 = vld [vmem:[%s687_s0 + $0x28] sm:$0xff]  ;;  %v65_v8 = vld [vmem:[%s687_s0 + $0x30] sm:$0xff] }
   0x4   :  { %22 = vst.msk [vmem:[#allocation2 + $0xa0] sm:$0xff] %vm16_vm0, %v417_v4  ;;  %23 = vst.msk [vmem:[#allocation2 + $0xc0] sm:$0xff] %vm16_vm0, %v417_v4  ;;  %v66_v9 = vld [vmem:[%s687_s0 + $0x38] sm:$0xff]  ;;  %v67_v10 = vld [vmem:[%s687_s0 + $0x40] sm:$0xff]  ;;  %v161_v27 = vsub.s32 0, %v160_v14  ;;  %v216_v28 = vsub.s32 1, %v160_v14 }
   0x5   :  { %24 = vst.msk [vmem:[#allocation2 + $0xe0] sm:$0xff] %vm16_vm0, %v417_v4  ;;  %25 = vst.msk [vmem:[#allocation2 + $0x100] sm:$0xff] %vm16_vm0, %v417_v4  ;;  %v68_v11 = vld [vmem:[%s687_s0 + $0x48] sm:$0xff]  ;;  %v69_v12 = vld [vmem:[%s687_s0 + $0x50] sm:$0xff]  ;;  %v288_v29 = vsub.s32 2, %v160_v14 }
   0x6   :  { %26 = vst.msk [vmem:[#allocation2 + $0x120] sm:$0xff] %vm16_vm0, %v417_v4  ;;  %27 = vst.msk [vmem:[#allocation2 + $0x140] sm:$0xff] %vm16_vm0, %v417_v4  ;;  %v70_v13 = vld [vmem:[%s687_s0 + $0x58] sm:$0xff]  ;;  %v71_v15 = vld [vmem:[%s687_s0 + $0x60] sm:$0xff] }
   0x7   :  { %28 = vst.msk [vmem:[#allocation2 + $0x160] sm:$0xff] %vm16_vm0, %v417_v4  ;;  %29 = vst.msk [vmem:[#allocation2 + $0x180] sm:$0xff] %vm16_vm0, %v417_v4  ;;  %v72_v16 = vld [vmem:[%s687_s0 + $0x68] sm:$0xff]  ;;  %v73_v17 = vld [vmem:[%s687_s0 + $0x70] sm:$0xff] }
   0x8   :  { %30 = vst.msk [vmem:[#allocation2 + $0x1a0] sm:$0xff] %vm16_vm0, %v417_v4  ;;  %31 = vst.msk [vmem:[#allocation2 + $0x1c0] sm:$0xff] %vm16_vm0, %v417_v4  ;;  %v74_v18 = vld [vmem:[%s687_s0 + $0x78] sm:$0xff]  ;;  %v75_v19 = vld [vmem:[%s687_s0 + $0x80] sm:$0xff] }
   0x9   :  { %32 = vst.msk [vmem:[#allocation2 + $0x1e0] sm:$0xff] %vm16_vm0, %v417_v4  ;;  %33 = vst.msk [vmem:[#allocation2 + $0x200] sm:$0xff] %vm16_vm0, %v417_v4  ;;  %v76_v20 = vld [vmem:[%s687_s0 + $0x88] sm:$0xff]  ;;  %v77_v21 = vld [vmem:[%s687_s0 + $0x90] sm:$0xff] }
   0xa   :  { %54 = vst.msk [vmem:[#allocation2 + $0x8] sm:$0xff] %vm16_vm0, %v417_v4  ;;  %55 = vst.msk [vmem:[#allocation2 + $0x10] sm:$0xff] %vm16_vm0, %v417_v4  ;;  %v78_v22 = vld [vmem:[%s687_s0 + $0x98] sm:$0xff]  ;;  %v79_v23 = vld [vmem:[%s687_s0 + $0xa0] sm:$0xff] }
   0xb   :  { %92 = vst.msk [vmem:[#allocation2 + $0x28] sm:$0xff] %vm16_vm0, %v59_v0  ;;  %93 = vst.msk [vmem:[#allocation2 + $0x30] sm:$0xff] %vm16_vm0, %v60_v1  ;;  %v80_v24 = vld [vmem:[%s687_s0 + $0xa8] sm:$0xff]  ;;  %v81_v25 = vld [vmem:[%s687_s0 + $0xb0] sm:$0xff] }
   0xc   :  { %94 = vst.msk [vmem:[#allocation2 + $0x48] sm:$0xff] %vm16_vm0, %v61_v2  ;;  %95 = vst.msk [vmem:[#allocation2 + $0x50] sm:$0xff] %vm16_vm0, %v62_v5  ;;  %v82_v26 = vld [vmem:[%s687_s0 + $0xb8] sm:$0xff]  ;;  %v83_v30 = vld [vmem:[%s687_s0 + $0xc0] sm:$0xff] }
   0xd   :  { %96 = vst.msk [vmem:[#allocation2 + $0x68] sm:$0xff] %vm16_vm0, %v63_v6  ;;  %97 = vst.msk [vmem:[#allocation2 + $0x70] sm:$0xff] %vm16_vm0, %v64_v7  ;;  %v84_v31 = vld [vmem:[%s687_s0 + $0xc8] sm:$0xff]  ;;  %v85_v32 = vld [vmem:[%s687_s0 + $0xd0] sm:$0xff] }
   0xe   :  { %98 = vst.msk [vmem:[#allocation2 + $0x88] sm:$0xff] %vm16_vm0, %v65_v8  ;;  %99 = vst.msk [vmem:[#allocation2 + $0x90] sm:$0xff] %vm16_vm0, %v66_v9  ;;  %v86_v33 = vld [vmem:[%s687_s0 + $0xd8] sm:$0xff]  ;;  %v87_v34 = vld [vmem:[%s687_s0 + $0xe0] sm:$0xff] }
   0xf   :  { %100 = vst.msk [vmem:[#allocation2 + $0xa8] sm:$0xff] %vm16_vm0, %v67_v10  ;;  %101 = vst.msk [vmem:[#allocation2 + $0xb0] sm:$0xff] %vm16_vm0, %v68_v11  ;;  %v88_v35 = vld [vmem:[%s687_s0 + $0xe8] sm:$0xff]  ;;  %v89_v36 = vld [vmem:[%s687_s0 + $0xf0] sm:$0xff] }
  0x10   :  { %102 = vst.msk [vmem:[#allocation2 + $0xc8] sm:$0xff] %vm16_vm0, %v69_v12  ;;  %103 = vst.msk [vmem:[#allocation2 + $0xd0] sm:$0xff] %vm16_vm0, %v70_v13  ;;  %v90_v37 = vld [vmem:[%s687_s0 + $0xf8] sm:$0xff]  ;;  %v124_v38 = vld [vmem:[%s688_s1] sm:$0x7] }
  0x11   :  { %104 = vst.msk [vmem:[#allocation2 + $0xe8] sm:$0xff] %vm16_vm0, %v71_v15  ;;  %105 = vst.msk [vmem:[#allocation2 + $0xf0] sm:$0xff] %vm16_vm0, %v72_v16  ;;  %v126_v39 = vld [vmem:[#allocation2 + $0x7] ss:$2 sm:$0xff]  ;;  %v586_v42 = vrot.slane %v124_v38, %v161_v27  ;;  %v588_v43 = vrot.slane %v124_v38, %v216_v28  ;;  %v590_v44 = vrot.slane %v124_v38, %v288_v29  ;;  %v181_v45 = vld [vmem:[#allocation2 + $0x8] ss:$2 sm:$0xff] }
  0x12   :  { %106 = vst.msk [vmem:[#allocation2 + $0x108] sm:$0xff] %vm16_vm0, %v73_v17  ;;  %107 = vst.msk [vmem:[#allocation2 + $0x110] sm:$0xff] %vm16_vm0, %v74_v18  ;;  %v128_v40 = vld [vmem:[#allocation2 + $0x27] ss:$2 sm:$0xff]  ;;  %v183_v46 = vld [vmem:[#allocation2 + $0x28] ss:$2 sm:$0xff] }
  0x13   :  { %108 = vst.msk [vmem:[#allocation2 + $0x128] sm:$0xff] %vm16_vm0, %v75_v19  ;;  %109 = vst.msk [vmem:[#allocation2 + $0x130] sm:$0xff] %vm16_vm0, %v76_v20  ;;  %v130_v41 = vld [vmem:[#allocation2 + $0x47] ss:$2 sm:$0xff]  ;;  %v185_v47 = vld [vmem:[#allocation2 + $0x48] ss:$2 sm:$0xff]  ;;  %v163_v48 = vadd.f32 %v586_v42, %v126_v39  ;;  %v164_v49 = vadd.f32 %v586_v42, %v128_v40  ;;  %v218_v51 = vadd.f32 %v588_v43, %v181_v45 }
  0x14   :  { %110 = vst.msk [vmem:[#allocation2 + $0x148] sm:$0xff] %vm16_vm0, %v77_v21  ;;  %111 = vst.msk [vmem:[#allocation2 + $0x150] sm:$0xff] %vm16_vm0, %v78_v22  ;;  %v165_v50 = vadd.f32 %v586_v42, %v130_v41  ;;  %v253_v52 = vld [vmem:[#allocation2 + $0x9] ss:$2 sm:$0xff]  ;;  %v219_v55 = vadd.f32 %v588_v43, %v183_v46  ;;  %v220_v56 = vadd.f32 %v588_v43, %v185_v47  ;;  %v187_v61 = vld [vmem:[#allocation2 + $0x68] ss:$2 sm:$0xff] }
  0x15   :  { %112 = vst.msk [vmem:[#allocation2 + $0x168] sm:$0xff] %vm16_vm0, %v79_v23  ;;  %113 = vst.msk [vmem:[#allocation2 + $0x170] sm:$0xff] %vm16_vm0, %v80_v24  ;;  %v255_v53 = vld [vmem:[#allocation2 + $0x29] ss:$2 sm:$0xff]  ;;  %v290_v57 = vadd.f32 %v590_v44, %v253_v52  ;;  %v235_v62 = vmax.f32 %v163_v48, %v218_v51  ;;  %v189_v2 = vld [vmem:[#allocation2 + $0x88] ss:$2 sm:$0xff]  ;;  %v221_v7 = vadd.f32 %v588_v43, %v187_v61 }
  0x16   :  { %114 = vst.msk [vmem:[#allocation2 + $0x188] sm:$0xff] %vm16_vm0, %v81_v25  ;;  %115 = vst.msk [vmem:[#allocation2 + $0x190] sm:$0xff] %vm16_vm0, %v82_v26  ;;  %v257_v54 = vld [vmem:[#allocation2 + $0x49] ss:$2 sm:$0xff]  ;;  %v291_v58 = vadd.f32 %v590_v44, %v255_v53  ;;  %v236_v5 = vmax.f32 %v164_v49, %v219_v55  ;;  %v237_v6 = vmax.f32 %v165_v50, %v220_v56  ;;  %v191_v11 = vld [vmem:[#allocation2 + $0xa8] ss:$2 sm:$0xff] }
  0x17   :  { %116 = vst.msk [vmem:[#allocation2 + $0x1a8] sm:$0xff] %vm16_vm0, %v83_v30  ;;  %117 = vst.msk [vmem:[#allocation2 + $0x1b0] sm:$0xff] %vm16_vm0, %v84_v31  ;;  %v132_v59 = vld [vmem:[#allocation2 + $0x67] ss:$2 sm:$0xff]  ;;  %v292_v63 = vadd.f32 %v590_v44, %v257_v54  ;;  %v222_v8 = vadd.f32 %v588_v43, %v189_v2  ;;  %v307_v12 = vmax.f32 %v235_v62, %v290_v57  ;;  %v193_v16 = vld [vmem:[#allocation2 + $0xc8] ss:$2 sm:$0xff] }
  0x18   :  { %118 = vst.msk [vmem:[#allocation2 + $0x1c8] sm:$0xff] %vm16_vm0, %v85_v32  ;;  %119 = vst.msk [vmem:[#allocation2 + $0x1d0] sm:$0xff] %vm16_vm0, %v86_v33  ;;  %v134_v60 = vld [vmem:[#allocation2 + $0x87] ss:$2 sm:$0xff]  ;;  %v166_v0 = vadd.f32 %v586_v42, %v132_v59  ;;  %v308_v17 = vmax.f32 %v236_v5, %v291_v58  ;;  %v223_v24 = vadd.f32 %v588_v43, %v191_v11 }
  0x19   :  { %120 = vst.msk [vmem:[#allocation2 + $0x1e8] sm:$0xff] %vm16_vm0, %v87_v34  ;;  %121 = vst.msk [vmem:[#allocation2 + $0x1f0] sm:$0xff] %vm16_vm0, %v88_v35  ;;  %v167_v1 = vadd.f32 %v586_v42, %v134_v60  ;;  %v259_v3 = vld [vmem:[#allocation2 + $0x69] ss:$2 sm:$0xff]  ;;  %v309_v18 = vmax.f32 %v237_v6, %v292_v63  ;;  %v324_v22 = vadd.f32 %v307_v12, %v586_v42  ;;  %v197_v45 = vld [vmem:[#allocation2 + $0x108] ss:$2 sm:$0xff] }
  0x1a   :  { %122 = vst.msk [vmem:[#allocation2 + $0x208] sm:$0xff] %vm16_vm0, %v89_v36  ;;  %123 = vst.msk [vmem:[#allocation2 + $0x210] sm:$0xff] %vm16_vm0, %v90_v37  ;;  %v261_v4 = vld [vmem:[#allocation2 + $0x89] ss:$2 sm:$0xff]  ;;  %v293_v13 = vadd.f32 %v590_v44, %v259_v3  ;;  %v238_v19 = vmax.f32 %v166_v0, %v221_v7  ;;  %v224_v25 = vadd.f32 %v588_v43, %v193_v16  ;;  %v195_v37 = vld [vmem:[#allocation2 + $0xe8] ss:$2 sm:$0xff] }
  0x1b   :  { %v136_v9 = vld [vmem:[#allocation2 + $0xa7] ss:$2 sm:$0xff]  ;;  %v294_v14 = vadd.f32 %v590_v44, %v261_v4  ;;  %v239_v20 = vmax.f32 %v167_v1, %v222_v8  ;;  %v332_v27 = vadd.f32 %v308_v17, %v588_v43  ;;  %v348_v28 = vadd.f32 %v309_v18, %v590_v44  ;;  %v199_v62 = vld [vmem:[#allocation2 + $0x128] ss:$2 sm:$0xff] }
  0x1c   :  { %v138_v10 = vld [vmem:[#allocation2 + $0xc7] ss:$2 sm:$0xff]  ;;  %v168_v15 = vadd.f32 %v586_v42, %v136_v9  ;;  %v310_v29 = vmax.f32 %v238_v19, %v293_v13  ;;  %v325_v33 = vadd.f32 %v309_v18, %v586_v42  ;;  %v225_v55 = vadd.f32 %v588_v43, %v195_v37  ;;  %v201_v63 = vld [vmem:[#allocation2 + $0x148] ss:$2 sm:$0xff] }
  0x1d   :  { %v263_v21 = vld [vmem:[#allocation2 + $0xa9] ss:$2 sm:$0xff]  ;;  %v169_v23 = vadd.f32 %v586_v42, %v138_v10  ;;  %v311_v30 = vmax.f32 %v239_v20, %v294_v14  ;;  %v340_v38 = vmax.f32 %v324_v22, %v332_v27  ;;  %v226_v59 = vadd.f32 %v588_v43, %v197_v45  ;;  %v203_v16 = vld [vmem:[#allocation2 + $0x168] ss:$2 sm:$0xff] }
  0x1e   :  { %v265_v26 = vld [vmem:[#allocation2 + $0xc9] ss:$2 sm:$0xff]  ;;  %v240_v34 = vmax.f32 %v168_v15, %v223_v24  ;;  %v295_v36 = vadd.f32 %v590_v44, %v263_v21  ;;  %v333_v39 = vadd.f32 %v310_v29, %v588_v43  ;;  %v227_v13 = vadd.f32 %v588_v43, %v199_v62  ;;  %v205_v17 = vld [vmem:[#allocation2 + $0x188] ss:$2 sm:$0xff] }
  0x1f   :  { %v140_v31 = vld [vmem:[#allocation2 + $0xe7] ss:$2 sm:$0xff]  ;;  %v241_v35 = vmax.f32 %v169_v23, %v224_v25  ;;  %v349_v40 = vadd.f32 %v311_v30, %v590_v44  ;;  %v296_v41 = vadd.f32 %v590_v44, %v265_v26  ;;  %v326_v49 = vadd.f32 %v311_v30, %v586_v42 }
  0x20   :  { %v142_v32 = vld [vmem:[#allocation2 + $0x107] ss:$2 sm:$0xff]  ;;  %v312_v48 = vmax.f32 %v240_v34, %v295_v36  ;;  %v170_v50 = vadd.f32 %v586_v42, %v140_v31  ;;  %v356_v52 = vmax.f32 %v340_v38, %v348_v28  ;;  %v341_v53 = vmax.f32 %v325_v33, %v333_v39 }
  0x21   :  { %v267_v46 = vld [vmem:[#allocation2 + $0xe9] ss:$2 sm:$0xff]  ;;  %v171_v51 = vadd.f32 %v586_v42, %v142_v32  ;;  %v313_v54 = vmax.f32 %v241_v35, %v296_v41  ;;  %v228_v14 = vadd.f32 %v588_v43, %v201_v63 }
  0x22   :  { %v269_v47 = vld [vmem:[#allocation2 + $0x109] ss:$2 sm:$0xff]  ;;  %v334_v58 = vadd.f32 %v312_v48, %v588_v43  ;;  %v297_v60 = vadd.f32 %v590_v44, %v267_v46  ;;  %365 = vst.msk [vmem:[#allocation3] sm:$0xff] %vm16_vm0, %v356_v52  ;;  %v357_v1 = vmax.f32 %v341_v53, %v349_v40  ;;  %v242_v3 = vmax.f32 %v170_v50, %v225_v55 }
  0x23   :  { %v144_v56 = vld [vmem:[#allocation2 + $0x127] ss:$2 sm:$0xff]  ;;  %v298_v61 = vadd.f32 %v590_v44, %v269_v47  ;;  %v350_v2 = vadd.f32 %v313_v54, %v590_v44  ;;  %v327_v4 = vadd.f32 %v313_v54, %v586_v42  ;;  %v243_v8 = vmax.f32 %v171_v51, %v226_v59 }
  0x24   :  { %v146_v57 = vld [vmem:[#allocation2 + $0x147] ss:$2 sm:$0xff]  ;;  %v342_v7 = vmax.f32 %v326_v49, %v334_v58  ;;  %v172_v9 = vadd.f32 %v586_v42, %v144_v56  ;;  %366 = vst.msk [vmem:[#allocation3 + $0x8] sm:$0xff] %vm16_vm0, %v357_v1  ;;  %v314_v12 = vmax.f32 %v242_v3, %v297_v60 }
  0x25   :  { %v271_v0 = vld [vmem:[#allocation2 + $0x129] ss:$2 sm:$0xff]  ;;  %v173_v10 = vadd.f32 %v586_v42, %v146_v57 }
  0x26   :  { %v273_v5 = vld [vmem:[#allocation2 + $0x149] ss:$2 sm:$0xff]  ;;  %v299_v15 = vadd.f32 %v590_v44, %v271_v0 }
  0x27   :  { %v148_v6 = vld [vmem:[#allocation2 + $0x167] ss:$2 sm:$0xff] }
  0x28   :  { %v150_v11 = vld [vmem:[#allocation2 + $0x187] ss:$2 sm:$0xff] }
  0x29   :  { %7 = vsyncpa [#allocation4], 0  ;;  %v358_v18 = vmax.f32 %v342_v7, %v350_v2  ;;  %v315_v19 = vmax.f32 %v243_v8, %v298_v61  ;;  %v300_v20 = vadd.f32 %v590_v44, %v273_v5  ;;  %v174_v21 = vadd.f32 %v586_v42, %v148_v6  ;;  %v275_v22 = vld [vmem:[#allocation2 + $0x169] ss:$2 sm:$0xff]  ;;  %v207_v38 = vld [vmem:[#allocation2 + $0x1a8] ss:$2 sm:$0xff] }
  0x2a   :  { %v335_v23 = vadd.f32 %v314_v12, %v588_v43  ;;  %v244_v24 = vmax.f32 %v172_v9, %v227_v13  ;;  %v245_v25 = vmax.f32 %v173_v10, %v228_v14  ;;  %v175_v26 = vadd.f32 %v586_v42, %v150_v11  ;;  %v277_v27 = vld [vmem:[#allocation2 + $0x189] ss:$2 sm:$0xff]  ;;  %v209_v46 = vld [vmem:[#allocation2 + $0x1c8] ss:$2 sm:$0xff]  ;;  %s418_s0 = smov [#allocation3]  }
  0x2b   :  { %v152_v28 = vld [vmem:[#allocation2 + $0x1a7] ss:$2 sm:$0xff]  ;;  %367 = vst.msk [vmem:[#allocation3 + $0x10] sm:$0xff] %vm16_vm0, %v358_v18  ;;  %v351_v29 = vadd.f32 %v315_v19, %v590_v44  ;;  %v328_v30 = vadd.f32 %v315_v19, %v586_v42  ;;  %v229_v31 = vadd.f32 %v588_v43, %v203_v16  ;;  %v230_v32 = vadd.f32 %v588_v43, %v205_v17  ;;  %v211_v63 = vld [vmem:[#allocation2 + $0x1e8] ss:$2 sm:$0xff]  ;;  %s378_s1 = sshll.u32 %s418_s0, 4  ;;  %s379_s1 = int_to_ptr.vmem [resolvable:$true] %s378_s1 }
  0x2c   :  { %v343_v33 = vmax.f32 %v327_v4, %v335_v23  ;;  %v316_v34 = vmax.f32 %v244_v24, %v299_v15  ;;  %v317_v35 = vmax.f32 %v245_v25, %v300_v20  ;;  %v301_v36 = vadd.f32 %v590_v44, %v275_v22  ;;  %v154_v37 = vld [vmem:[#allocation2 + $0x1c7] ss:$2 sm:$0xff]  ;;  %v213_v0 = vld [vmem:[#allocation2 + $0x208] ss:$2 sm:$0xff]  ;;  %s393_s19 = scalar_lea.vmem %s379_s1, 1024  ;;  %p398_p1 = scmp.lt.s32.totalorder %s379_s1, %s379_s1 }
  0x2d   :  { %v246_v39 = vmax.f32 %v174_v21, %v229_v31  ;;  %v247_v40 = vmax.f32 %v175_v26, %v230_v32  ;;  %v302_v41 = vadd.f32 %v590_v44, %v277_v27  ;;  %v176_v45 = vadd.f32 %v586_v42, %v152_v28  ;;  %v279_v47 = vld [vmem:[#allocation2 + $0x1a9] ss:$2 sm:$0xff]  ;;  %p394_p0 = scmp.ne.s32.totalorder %s379_s1, %s393_s19  ;;  %p399_p2 = scmp.lt.s32.totalorder %s393_s19, %s393_s19 }
  0x2e   :  { %v281_v48 = vld [vmem:[#allocation2 + $0x1c9] ss:$2 sm:$0xff]  ;;  %v359_v49 = vmax.f32 %v343_v33, %v351_v29  ;;  %v336_v50 = vadd.f32 %v316_v34, %v588_v43  ;;  %v352_v51 = vadd.f32 %v317_v35, %v590_v44  ;;  %v329_v52 = vadd.f32 %v317_v35, %v586_v42 }
  0x2f   :  { %v318_v53 = vmax.f32 %v246_v39, %v301_v36  ;;  %v319_v54 = vmax.f32 %v247_v40, %v302_v41  ;;  %v177_v55 = vadd.f32 %v586_v42, %v154_v37  ;;  %v231_v56 = vadd.f32 %v588_v43, %v207_v38  ;;  %v156_v57 = vld [vmem:[#allocation2 + $0x1e7] ss:$2 sm:$0xff]  ;;  %p400_p3 = por %p399_p2, %p398_p1 }
  0x30   :  { %v158_v58 = vld [vmem:[#allocation2 + $0x207] ss:$2 sm:$0xff]  ;;  %368 = vst.msk [vmem:[#allocation3 + $0x18] sm:$0xff] %vm16_vm0, %v359_v49  ;;  %v344_v59 = vmax.f32 %v328_v30, %v336_v50  ;;  %v232_v60 = vadd.f32 %v588_v43, %v209_v46  ;;  %v303_v61 = vadd.f32 %v590_v44, %v279_v47  ;;  %v304_v62 = vadd.f32 %v590_v44, %v281_v48 }
  0x31   :  { %v337_v1 = vadd.f32 %v318_v53, %v588_v43  ;;  %v353_v2 = vadd.f32 %v319_v54, %v590_v44  ;;  %v248_v3 = vmax.f32 %v176_v45, %v231_v56  ;;  %v330_v4 = vadd.f32 %v319_v54, %v586_v42  ;;  %v283_v5 = vld [vmem:[#allocation2 + $0x1e9] ss:$2 sm:$0xff]  ;;  %p401_p4 = pnand %p400_p3, %p394_p0 }
  0x32   :  { %v285_v6 = vld [vmem:[#allocation2 + $0x209] ss:$2 sm:$0xff]  ;;  %v360_v7 = vmax.f32 %v344_v59, %v352_v51  ;;  %v249_v8 = vmax.f32 %v177_v55, %v232_v60  ;;  %v178_v9 = vadd.f32 %v586_v42, %v156_v57  ;;  %v179_v10 = vadd.f32 %v586_v42, %v158_v58 }
  0x33   :  { %v345_v11 = vmax.f32 %v329_v52, %v337_v1  ;;  %v320_v12 = vmax.f32 %v248_v3, %v303_v61  ;;  %v233_v13 = vadd.f32 %v588_v43, %v211_v63  ;;  %v234_v14 = vadd.f32 %v588_v43, %v213_v0 }
  0x34   :  { %369 = vst.msk [vmem:[#allocation3 + $0x20] sm:$0xff] %vm16_vm0, %v360_v7  ;;  %v321_v15 = vmax.f32 %v249_v8, %v304_v62  ;;  %v305_v16 = vadd.f32 %v590_v44, %v283_v5  ;;  %v306_v17 = vadd.f32 %v590_v44, %v285_v6 }
  0x35   :  { %v361_v18 = vmax.f32 %v345_v11, %v353_v2  ;;  %v338_v19 = vadd.f32 %v320_v12, %v588_v43  ;;  %v250_v20 = vmax.f32 %v178_v9, %v233_v13  ;;  %v251_v21 = vmax.f32 %v179_v10, %v234_v14 }
  0x36   :  { %v354_v22 = vadd.f32 %v321_v15, %v590_v44  ;;  %v331_v26 = vadd.f32 %v321_v15, %v586_v42 }
  0x37   :  { %370 = vst.msk [vmem:[#allocation3 + $0x28] sm:$0xff] %vm16_vm0, %v361_v18  ;;  %v346_v23 = vmax.f32 %v330_v4, %v338_v19  ;;  %v322_v24 = vmax.f32 %v250_v20, %v305_v16  ;;  %v323_v25 = vmax.f32 %v251_v21, %v306_v17 }
  0x39   :  { %v362_v27 = vmax.f32 %v346_v23, %v354_v22  ;;  %v339_v28 = vadd.f32 %v322_v24, %v588_v43  ;;  %v355_v30 = vadd.f32 %v323_v25, %v590_v44 }
  0x3b   :  { %371 = vst.msk [vmem:[#allocation3 + $0x30] sm:$0xff] %vm16_vm0, %v362_v27  ;;  %v347_v29 = vmax.f32 %v331_v26, %v339_v28 }
  0x3d   :  { %v363_v31 = vmax.f32 %v347_v29, %v355_v30 }
  0x3f   :  { %372 = vst.msk [vmem:[#allocation3 + $0x38] sm:$0xff] %vm16_vm0, %v363_v31 }
  0x40   :  { %404 = shalt.err (!%p401_p4)
}
  0x41   :  { %s405_s22 = scalar_lea.hbm %s689_s2, 1024 }
  0x42   :  { %p406_p5 = scmp.ne.s32.totalorder %s689_s2, %s405_s22  ;;  %p409_p6 = scmp.lt.u32.totalorder %s405_s22, %s689_s2 }
  0x44   :  { %p411_p7 = pnand %p409_p6, %p406_p5 }
  0x46   :  { %414 = shalt.err (!%p411_p7)
}
  0x47   :  { %s419_s27 = smov 128   ;;  %s420_s28 = smov 8  }
  0x48   :  { %384 = dma.vmem_to_hbm [thread:$0]  %s379_s1, 1024, %s689_s2, [#allocation4], %s419_s27, %s419_s27, %s420_s28  }
  0x49   :  { %415 = dma.done.wait [#allocation4], 1024  }
  0x4a   :  { %416 = vsyncadd [#allocation4], 4294966272 }
  0x4b   :  { %388 = vsyncpa [#allocation4], 1 }

</bundles_post_ra>
